<compile_context>
chip_gen: v7x
topology: tpu7x:2x2x1
jax: 0.10.0
libtpu: 0.0.40
codegen_flags: <defaults>
</compile_context>

<pallas_src>
import jax
import jax.numpy as jnp
from jax.experimental import pallas as pl
from jax.experimental.pallas import tpu as pltpu


def _make_kernel(width, height, col_tile, has_mask, has_emb):
    two_w = 2 * width
    k_tile = 2 * col_tile

    def kernel(*refs):
        refs = list(refs)
        x_ref = refs.pop(0)        # (1, 2W, H)   rows = [re columns | im columns]
        dft_ref = refs.pop(0)      # (2W, 2W)     real row-DFT matrix
        ci_ref = refs.pop(0)       # (col_tile, W) cos table * (1/W), chunk ic
        si_ref = refs.pop(0)       # (col_tile, W) sin table * (1/W), chunk ic
        mask_ref = refs.pop(0) if has_mask else None   # (1, H, W)
        emb_ref = refs.pop(0) if has_emb else None     # (1, E, H, W)
        o_ref = refs.pop(0)        # (1, out_c, H, W)  resident per batch element
        zhat_ref = refs.pop(0)     # (2W, H) scratch: [Re Zhat ; Im Zhat]^T

        ic = pl.program_id(1)

        # One small f32 MXU matmul per batch element (first chunk only).
        @pl.when(ic == 0)
        def _():
            zhat_ref[...] = jnp.dot(dft_ref[...], x_ref[0],
                                    preferred_element_type=jnp.float32)

        # This chunk covers k-space columns [ic*col_tile, (ic+1)*col_tile).
        col0 = pl.multiple_of(ic * col_tile, col_tile)
        im0 = pl.multiple_of(width + ic * col_tile, col_tile)
        zr = zhat_ref[pl.ds(col0, col_tile), :]          # (ct, H)  Re Zhat
        zi = zhat_ref[pl.ds(im0, col_tile), :]           # (ct, H)  Im Zhat

        cc = ci_ref[...][:, None, :]                     # (ct, 1, W)
        ss = si_ref[...][:, None, :]
        zr3 = zr[:, :, None]                             # (ct, H, 1)
        zi3 = zi[:, :, None]
        # Rank-1 outer products on the VPU (1/W already folded into cc/ss).
        real = zr3 * cc - zi3 * ss                       # (ct, H, W)
        imag = zr3 * ss + zi3 * cc                       # (ct, H, W)
        # Interleave to channel order k = 2*i + {0: real, 1: imag}.
        chunk = jnp.stack([real, imag], axis=1).reshape(k_tile, height, width)
        if has_mask:
            chunk = chunk + mask_ref[...]                # (1, H, W) broadcast

        k0 = pl.multiple_of(ic * k_tile, k_tile)
        o_ref[0, pl.ds(k0, k_tile), :, :] = chunk.astype(o_ref.dtype)

        if has_emb:
            # Fused concat: write the embedding once per batch element.
            @pl.when(ic == pl.num_programs(1) - 1)
            def _():
                o_ref[0, two_w:, :, :] = emb_ref[0].astype(o_ref.dtype)

    return kernel


def spectral_map_decomposition(reconstructed_image, mask_embedding, mask, *,
                               col_tile=8):
    x = reconstructed_image
    assert x.ndim == 4 and x.shape[1] == 2, "expected (B, 2, H, W) input"
    batch, _, height, width = x.shape
    two_w = 2 * width
    if width % col_tile != 0:
        col_tile = width                       # single chunk fallback
    nc = width // col_tile
    k_tile = 2 * col_tile

    # x[b, c, h, w] -> xt[b, c*W + w, h]  (rows = stacked re/im k-space columns).
    xt = jnp.transpose(x, (0, 1, 3, 2)).reshape(batch, two_w, height)
    xt = xt.astype(jnp.float32)

    # Factorized operator tables (built once on the host, tiny).
    idx = jnp.arange(width, dtype=jnp.float32)
    theta = (2.0 * jnp.pi / width) * (idx[:, None] * idx[None, :])   # theta[i, w]
    c = jnp.cos(theta)
    s = jnp.sin(theta)
    # ZhatT = dft @ xt[b]:  rows i -> Re Zhat[:, i],  rows W+i -> Im Zhat[:, i].
    dft = jnp.concatenate([jnp.concatenate([c, s], axis=1),
                           jnp.concatenate([-s, c], axis=1)], axis=0)  # (2W, 2W)
    inv_w = jnp.float32(1.0 / width)
    ci = c * inv_w                              # inverse-transform tables, 1/W folded
    si = s * inv_w

    has_mask = mask is not None
    has_emb = mask_embedding is not None

    in_specs = [
        pl.BlockSpec((1, two_w, height), lambda b, ic: (b, 0, 0)),
        pl.BlockSpec((two_w, two_w), lambda b, ic: (0, 0)),
        pl.BlockSpec((col_tile, width), lambda b, ic: (ic, 0)),
        pl.BlockSpec((col_tile, width), lambda b, ic: (ic, 0)),
    ]
    args = [xt, dft, ci, si]

    if has_mask:
        # TODO(synk): masks with a trailing channel dim > 1 hit the original
        # code's (W, 2)->(2, W) view reinterpretation and are not supported here.
        m2d = jax.lax.stop_gradient(mask).reshape(batch, height, width)
        args.append(m2d.astype(jnp.float32))
        in_specs.append(pl.BlockSpec((1, height, width), lambda b, ic: (b, 0, 0)))

    emb_c = 0
    if has_emb:
        emb = mask_embedding.astype(jnp.float32)
        emb_c = emb.shape[1]
        args.append(emb)
        in_specs.append(
            pl.BlockSpec((1, emb_c, height, width), lambda b, ic: (b, 0, 0, 0)))

    out_c = two_w + emb_c

    # Explicit VMEM budget: floor at the 32 MiB default, grow only if the
    # per-batch output block actually needs it.
    elt = 4
    need = (2 * (out_c * height * width
                 + two_w * height
                 + (height * width if has_mask else 0)
                 + (emb_c * height * width if has_emb else 0)
                 + 2 * col_tile * width)
            + two_w * two_w
            + two_w * height) * elt
    vmem_limit = int(min(max(32 * 1024 * 1024, 2 * need), 128 * 1024 * 1024))

    kernel = _make_kernel(width, height, col_tile, has_mask, has_emb)

    return pl.pallas_call(
        kernel,
        out_shape=jax.ShapeDtypeStruct((batch, out_c, height, width), jnp.float32),
        grid_spec=pltpu.PrefetchScalarGridSpec(
            num_scalar_prefetch=0,
            grid=(batch, nc),
            in_specs=in_specs,
            out_specs=pl.BlockSpec((1, out_c, height, width),
                                   lambda b, ic: (b, 0, 0, 0)),
            scratch_shapes=[pltpu.VMEM((two_w, height), jnp.float32)],
        ),
        compiler_params=pltpu.CompilerParams(
            dimension_semantics=("parallel", "arbitrary"),
            vmem_limit_bytes=vmem_limit,
        ),
    )(*args)


if __name__ == "__main__":
    key = jax.random.PRNGKey(0)
    kx, km, ke = jax.random.split(key, 3)

    B, H, W, E = 2, 16, 16, 4
    x = jax.random.normal(kx, (B, 2, H, W), jnp.float32)          # (re, im) image
    mask = 0.5 * jax.random.normal(km, (B, H, W, 1), jnp.float32)
    mask_embedding = jax.random.normal(ke, (B, E, H, W), jnp.float32)

    out = jax.block_until_ready(
        jax.jit(spectral_map_decomposition)(x, mask_embedding, mask))
    assert out.shape == (B, 2 * W + E, H, W)

    # Pure-JAX reference mirroring the PyTorch forward:
    # FFT2 -> per-column k-space masking -> IFFT2 -> +mask -> concat embedding.
    z = x[:, 0] + 1j * x[:, 1]
    kspace = jnp.fft.fftn(z, axes=(1, 2))
    chans = []
    for i in range(W):
        k_i = jnp.zeros_like(kspace).at[:, :, i].set(kspace[:, :, i])
        s_i = jnp.fft.ifftn(k_i, axes=(1, 2))
        chans.append(jnp.real(s_i))
        chans.append(jnp.imag(s_i))
    base = jnp.stack(chans, axis=1)                                # (B, 2W, H, W)
    ref = jnp.concatenate([base + mask[..., 0][:, None, :, :], mask_embedding],
                          axis=1)

    err = float(jnp.max(jnp.abs(out - ref)))
    assert err < 5e-3, f"max |err| = {err}"

    # mask=None / mask_embedding=None path (exercises the trimmed kernel body).
    out2 = jax.block_until_ready(
        jax.jit(lambda a: spectral_map_decomposition(a, None, None))(x))
    assert out2.shape == (B, 2 * W, H, W)
    err2 = float(jnp.max(jnp.abs(out2 - base)))
    assert err2 < 5e-3, f"max |err| = {err2}"

    print("KERNEL_OK")
</pallas_src>

<mosaic_0001>
module attributes {stable_mosaic.version = 11 : i64} {
  func.func @kernel(%arg0: i32, %arg1: i32, %arg2: memref<1x32x16xf32, #tpu.memory_space<vmem>>, %arg3: memref<32x32xf32, #tpu.memory_space<vmem>>, %arg4: memref<8x16xf32, #tpu.memory_space<vmem>>, %arg5: memref<8x16xf32, #tpu.memory_space<vmem>>, %arg6: memref<1x16x16xf32, #tpu.memory_space<vmem>>, %arg7: memref<1x4x16x16xf32, #tpu.memory_space<vmem>>, %arg8: memref<1x36x16x16xf32, #tpu.memory_space<vmem>>, %arg9: memref<32x16xf32, #tpu.memory_space<vmem>>) attributes {dimension_semantics = [#tpu.dimension_semantics<parallel>, #tpu.dimension_semantics<arbitrary>], iteration_bounds = array<i64: 2, 2>, scalar_prefetch = 0 : i64, scratch_operands = 1 : i64, tpu.core_type = #tpu.core_type<tc>, window_params = [{transform_indices = @transform_0, window_bounds = array<i64: 1, 32, 16>}, {pipeline_mode = #tpu.pipeline_mode<synchronous>, transform_indices = @transform_1, window_bounds = array<i64: 32, 32>}, {transform_indices = @transform_2, window_bounds = array<i64: 8, 16>}, {transform_indices = @transform_3, window_bounds = array<i64: 8, 16>}, {transform_indices = @transform_4, window_bounds = array<i64: 1, 16, 16>}, {transform_indices = @transform_5, window_bounds = array<i64: 1, 4, 16, 16>}, {transform_indices = @transform_6, window_bounds = array<i64: 1, 36, 16, 16>}]} {
    %c0_i32 = arith.constant 0 : i32
    %0 = arith.cmpi eq, %arg1, %c0_i32 : i32
    %1 = arith.extui %0 : i1 to i32
    %c0_i32_0 = arith.constant 0 : i32
    %2 = arith.cmpi ne, %1, %c0_i32_0 : i32
    scf.if %2 {
      %c0_15 = arith.constant 0 : index
      %c0_16 = arith.constant 0 : index
      %48 = vector.load %arg3[%c0_15, %c0_16] : memref<32x32xf32, #tpu.memory_space<vmem>>, vector<32x32xf32>
      %c0_17 = arith.constant 0 : index
      %c0_18 = arith.constant 0 : index
      %c0_19 = arith.constant 0 : index
      %49 = vector.load %arg2[%c0_17, %c0_18, %c0_19] : memref<1x32x16xf32, #tpu.memory_space<vmem>>, vector<1x32x16xf32>
      %50 = vector.shape_cast %49 : vector<1x32x16xf32> to vector<32x16xf32>
      %cst = arith.constant dense<0.000000e+00> : vector<32x16xf32>
      %51 = tpu.matmul %48, %50, %cst {dimension_numbers = #tpu.dot_dimension_numbers<[1], [0], [0], [1], [0, 0, 1, 1], [], []>} : vector<32x32xf32>, vector<32x16xf32>, vector<32x16xf32> -> vector<32x16xf32>
      %c0_20 = arith.constant 0 : index
      %c0_21 = arith.constant 0 : index
      %52 = vector.load %arg9[%c0_20, %c0_21] : memref<32x16xf32, #tpu.memory_space<vmem>>, vector<32x16xf32>
      tpu.vector_store %arg9[%c0_20, %c0_21], %51 {strides = array<i32>} : memref<32x16xf32, #tpu.memory_space<vmem>>, vector<32x16xf32>,
    } else {
    }
    %c8_i32 = arith.constant 8 : i32
    %3 = arith.muli %arg1, %c8_i32 : i32
    %4 = tpu.assume_multiple %3, 8 : i32
    %c8_i32_1 = arith.constant 8 : i32
    %5 = arith.muli %arg1, %c8_i32_1 : i32
    %c16_i32 = arith.constant 16 : i32
    %6 = arith.addi %c16_i32, %5 : i32
    %7 = tpu.assume_multiple %6, 8 : i32
    %8 = arith.index_cast %4 : i32 to index
    %c0 = arith.constant 0 : index
    %9 = vector.load %arg9[%8, %c0] : memref<32x16xf32, #tpu.memory_space<vmem>>, vector<8x16xf32>
    %10 = arith.index_cast %7 : i32 to index
    %c0_2 = arith.constant 0 : index
    %11 = vector.load %arg9[%10, %c0_2] : memref<32x16xf32, #tpu.memory_space<vmem>>, vector<8x16xf32>
    %c0_3 = arith.constant 0 : index
    %c0_4 = arith.constant 0 : index
    %12 = vector.load %arg4[%c0_3, %c0_4] : memref<8x16xf32, #tpu.memory_space<vmem>>, vector<8x16xf32>
    %13 = vector.shape_cast %12 : vector<8x16xf32> to vector<8x1x16xf32>
    %c0_5 = arith.constant 0 : index
    %c0_6 = arith.constant 0 : index
    %14 = vector.load %arg5[%c0_5, %c0_6] : memref<8x16xf32, #tpu.memory_space<vmem>>, vector<8x16xf32>
    %15 = vector.shape_cast %14 : vector<8x16xf32> to vector<8x1x16xf32>
    %16 = vector.shape_cast %9 : vector<8x16xf32> to vector<8x16x1xf32>
    %17 = vector.shape_cast %11 : vector<8x16xf32> to vector<8x16x1xf32>
    %18 = vector.broadcast %16 : vector<8x16x1xf32> to vector<8x16x16xf32>
    %19 = vector.broadcast %13 : vector<8x1x16xf32> to vector<8x16x16xf32>
    %20 = arith.mulf %18, %19 : vector<8x16x16xf32>
    %21 = vector.broadcast %17 : vector<8x16x1xf32> to vector<8x16x16xf32>
    %22 = vector.broadcast %15 : vector<8x1x16xf32> to vector<8x16x16xf32>
    %23 = arith.mulf %21, %22 : vector<8x16x16xf32>
    %24 = arith.subf %20, %23 : vector<8x16x16xf32>
    %25 = vector.broadcast %16 : vector<8x16x1xf32> to vector<8x16x16xf32>
    %26 = vector.broadcast %15 : vector<8x1x16xf32> to vector<8x16x16xf32>
    %27 = arith.mulf %25, %26 : vector<8x16x16xf32>
    %28 = vector.broadcast %17 : vector<8x16x1xf32> to vector<8x16x16xf32>
    %29 = vector.broadcast %13 : vector<8x1x16xf32> to vector<8x16x16xf32>
    %30 = arith.mulf %28, %29 : vector<8x16x16xf32>
    %31 = arith.addf %27, %30 : vector<8x16x16xf32>
    %32 = vector.shape_cast %24 : vector<8x16x16xf32> to vector<8x1x16x16xf32>
    %33 = vector.shape_cast %31 : vector<8x16x16xf32> to vector<8x1x16x16xf32>
    %34 = tpu.concatenate %32, %33 in 1 : vector<8x1x16x16xf32>, vector<8x1x16x16xf32> -> vector<8x2x16x16xf32>
    %35 = vector.shape_cast %34 : vector<8x2x16x16xf32> to vector<16x16x16xf32>
    %c0_7 = arith.constant 0 : index
    %c0_8 = arith.constant 0 : index
    %c0_9 = arith.constant 0 : index
    %36 = vector.load %arg6[%c0_7, %c0_8, %c0_9] : memref<1x16x16xf32, #tpu.memory_space<vmem>>, vector<1x16x16xf32>
    %37 = vector.broadcast %36 : vector<1x16x16xf32> to vector<16x16x16xf32>
    %38 = arith.addf %35, %37 : vector<16x16x16xf32>
    %c16_i32_10 = arith.constant 16 : i32
    %39 = arith.muli %arg1, %c16_i32_10 : i32
    %40 = tpu.assume_multiple %39, 16 : i32
    %c0_11 = arith.constant 0 : index
    %41 = arith.index_cast %40 : i32 to index
    %c0_12 = arith.constant 0 : index
    %c0_13 = arith.constant 0 : index
    %42 = vector.load %arg8[%c0_11, %41, %c0_12, %c0_13] : memref<1x36x16x16xf32, #tpu.memory_space<vmem>>, vector<1x16x16x16xf32>
    %43 = vector.shape_cast %42 : vector<1x16x16x16xf32> to vector<16x16x16xf32>
    %44 = vector.shape_cast %38 : vector<16x16x16xf32> to vector<1x16x16x16xf32>
    tpu.vector_store %arg8[%c0_11, %41, %c0_12, %c0_13], %44 {strides = array<i32>} : memref<1x36x16x16xf32, #tpu.memory_space<vmem>>, vector<1x16x16x16xf32>,
    %c1_i32 = arith.constant 1 : i32
    %45 = arith.cmpi eq, %arg1, %c1_i32 : i32
    %46 = arith.extui %45 : i1 to i32
    %c0_i32_14 = arith.constant 0 : i32
    %47 = arith.cmpi ne, %46, %c0_i32_14 : i32
    scf.if %47 {
      %c0_15 = arith.constant 0 : index
      %c0_16 = arith.constant 0 : index
      %c0_17 = arith.constant 0 : index
      %c0_18 = arith.constant 0 : index
      %48 = vector.load %arg7[%c0_15, %c0_16, %c0_17, %c0_18] : memref<1x4x16x16xf32, #tpu.memory_space<vmem>>, vector<1x4x16x16xf32>
      %49 = vector.shape_cast %48 : vector<1x4x16x16xf32> to vector<4x16x16xf32>
      %c0_19 = arith.constant 0 : index
      %c32 = arith.constant 32 : index
      %c0_20 = arith.constant 0 : index
      %c0_21 = arith.constant 0 : index
      %50 = vector.load %arg8[%c0_19, %c32, %c0_20, %c0_21] : memref<1x36x16x16xf32, #tpu.memory_space<vmem>>, vector<1x4x16x16xf32>
      %51 = vector.shape_cast %50 : vector<1x4x16x16xf32> to vector<4x16x16xf32>
      %52 = vector.shape_cast %49 : vector<4x16x16xf32> to vector<1x4x16x16xf32>
      tpu.vector_store %arg8[%c0_19, %c32, %c0_20, %c0_21], %52 {strides = array<i32>} : memref<1x36x16x16xf32, #tpu.memory_space<vmem>>, vector<1x4x16x16xf32>,
    } else {
    }
    return
  }
  func.func @transform_0(%arg0: i32, %arg1: i32) -> (i32, i32, i32) {
    %c0_i32 = arith.constant 0 : i32
    %c0_i32_0 = arith.constant 0 : i32
    %c0_i32_1 = arith.constant 0 : i32
    return %arg0, %c0_i32, %c0_i32_0 : i32, i32, i32
  }
  func.func @transform_1(%arg0: i32, %arg1: i32) -> (i32, i32) {
    %c0_i32 = arith.constant 0 : i32
    %c0_i32_0 = arith.constant 0 : i32
    %c0_i32_1 = arith.constant 0 : i32
    return %c0_i32, %c0_i32_0 : i32, i32
  }
  func.func @transform_2(%arg0: i32, %arg1: i32) -> (i32, i32) {
    %c0_i32 = arith.constant 0 : i32
    %c0_i32_0 = arith.constant 0 : i32
    return %arg1, %c0_i32 : i32, i32
  }
  func.func @transform_3(%arg0: i32, %arg1: i32) -> (i32, i32) {
    %c0_i32 = arith.constant 0 : i32
    %c0_i32_0 = arith.constant 0 : i32
    return %arg1, %c0_i32 : i32, i32
  }
  func.func @transform_4(%arg0: i32, %arg1: i32) -> (i32, i32, i32) {
    %c0_i32 = arith.constant 0 : i32
    %c0_i32_0 = arith.constant 0 : i32
    %c0_i32_1 = arith.constant 0 : i32
    return %arg0, %c0_i32, %c0_i32_0 : i32, i32, i32
  }
  func.func @transform_5(%arg0: i32, %arg1: i32) -> (i32, i32, i32, i32) {
    %c0_i32 = arith.constant 0 : i32
    %c0_i32_0 = arith.constant 0 : i32
    %c0_i32_1 = arith.constant 0 : i32
    %c0_i32_2 = arith.constant 0 : i32
    return %arg0, %c0_i32, %c0_i32_0, %c0_i32_1 : i32, i32, i32, i32
  }
  func.func @transform_6(%arg0: i32, %arg1: i32) -> (i32, i32, i32, i32) {
    %c0_i32 = arith.constant 0 : i32
    %c0_i32_0 = arith.constant 0 : i32
    %c0_i32_1 = arith.constant 0 : i32
    %c0_i32_2 = arith.constant 0 : i32
    return %arg0, %c0_i32, %c0_i32_0, %c0_i32_1 : i32, i32, i32, i32
  }
}

</mosaic_0001>

<bundles_post_ra>
// kernel: spectral_map_decomposition.1
= control target key start
LH: loop header
LB: loop body
LE: loop exit
PB: predicated region body
PF: predicated region fallthrough
CT: control target
= control target key end

     0   :  { %s1318_s21 = smov 0   ;;  %s1320_s22 = smov 0   ;;  %s1743_s0 = inlined_call_operand.vmem [shape: f32[2,32,16], index: 0, kind: input, shape index: {}]   ;;  %s1744_s1 = inlined_call_operand.vmem [shape: f32[32,32], index: 1, kind: input, shape index: {}]   ;;  %s1745_s2 = inlined_call_operand.vmem [shape: f32[16,16], index: 2, kind: input, shape index: {}]   ;;  %s1746_s3 = inlined_call_operand.vmem [shape: f32[16,16], index: 3, kind: input, shape index: {}]   ;;  %s1747_s4 = inlined_call_operand.vmem [shape: f32[2,16,16], index: 4, kind: input, shape index: {}]   ;;  %s1748_s5 = inlined_call_operand.vmem [shape: f32[2,4,16,16], index: 5, kind: input, shape index: {}]   ;;  %s1749_s6 = inlined_call_operand.vmem [shape: f32[2,36,16,16], index: 6, kind: output, shape index: {}]  }
   0x1   :  { %s1322_s23 = smov 0   ;;  %s1324_s24 = smov 0  }
   0x2   :  { %s1326_s25 = smov 0  }
   0x3 LB: > { %s25_s26 = sadd.s32 1, %s1272_s23  ;;  %s28_s27 = sadd.s32 1, %s1276_s24  ;;  %s1280_s25 = sphi %s1326_s25, %s16_s25   ;;  %s1276_s24 = sphi %s1324_s24, %s1755_s24   ;;  %s1272_s23 = sphi %s1322_s23, %s1754_s23   ;;  %s1268_s22 = sphi %s1320_s22, %s1753_s22   ;;  %s1264_s21 = sphi %s1318_s21, %s1752_s21  }
   0x4   : > { %p26_p0 = scmp.ge.s32.totalorder %s25_s26, 2  ;;  %p1129_p1 = scmp.ge.s32.totalorder %s1280_s25, 1 }
   0x5   : > { %p262_p2 = scmp.lt.s32.totalorder %s1280_s25, 5 }
   0x6   : > { %s1757_s26 = smov (%p26_p0, %s25_s26), 0  ;;  %s1759_s27 = smov (!%p26_p0, %s28_s27), %s1276_s24 }
   0x7   : > { %p263_p3 = pnand %p1129_p1, %p262_p2  ;;  %p30_p4 = scmp.ge.s32.totalorder %s1759_s27, 2 }
   0x8   : > { %p310_p5 = scmp.lt.s32.totalorder (!%p263_p3), %s1268_s22, 1  ;;  %p315_p6 = scmp.lt.s32.totalorder (!%p263_p3), %s1264_s21, 1 }
   0x9   : > { %s1761_s27 = smov (%p30_p4, %s1759_s27), 0  ;;  %266 = sbr.rel (%p263_p3) target bundleno = 443 (0x1bb), region = 44 }
   0xa   : > { %1750 = sst [smem:[#allocation3_spill]] %s1761_s27  ;;  %p1139_p7 = scmp.ne.s32.totalorder (!%p263_p3), %s1264_s21, 0 }
  0x10   : > { %s1763_s22 = smov (!%p310_p5, %s1268_s22), 1  ;;  %vm350_vm0 = vcmask (!%p1139_p7), 261120   ;;  %v342_v5 = vld [vmem:[%s1744_s1] sm:$0xff] (!%p1139_p7)  ;;  %v344_v6 = vld [vmem:[%s1744_s1 + $0x10] sm:$0xff] (!%p1139_p7)  ;;  %v343_v8 = vld [vmem:[%s1744_s1 + $0x8] sm:$0xff] (!%p1139_p7)  ;;  %vm448_vm1 = vcmask (!%p1139_p7), 130048  }
  0x11   : > { %s316_s28 = scalar_select %p315_p6, %s1264_s21, 1 }
  0x12   : > { %s1160_s29 = sshll.u32 %s1763_s22, 5  ;;  %s1161_s30 = sshll.u32 %s1763_s22, 4  ;;  %1180 = vmatprep.mubr.msk.f32.mxu0 (!%p1139_p7), %vm350_vm0, %v342_v5  ;;  %1183 = vmatprep.mubr.msk.f32.mxu1 (!%p1139_p7), %vm350_vm0, %v344_v6  ;;  %v345_v9 = vld [vmem:[%s1744_s1 + $0x18] sm:$0xff] (!%p1139_p7) }
  0x13   : > { %s314_s9 = scalar_lea.vmem %s1743_s0, %s1160_s29  ;;  %s1132_s10 = sshll.u32 %s316_s28, 3 }
  0x14   : > { %s1358_s13 = scalar_lea.vmem %s1745_s2, %s1132_s10  ;;  %s1363_s16 = scalar_lea.vmem %s1746_s3, %s1132_s10  ;;  %v346_v0 = vld [vmem:[%s314_s9] sm:$0xff] (!%p1139_p7)  ;;  %v347_v1 = vld [vmem:[%s314_s9 + $0x8] sm:$0xff] (!%p1139_p7)  ;;  %v348_v2 = vld [vmem:[%s314_s9 + $0x10] sm:$0xff] (!%p1139_p7) }
  0x15   : > { %s1368_s19 = scalar_lea.vmem %s1747_s4, %s1161_s30  ;;  %s1162_s20 = sshll.u32 %s1763_s22, 6  ;;  %v1186_v3 = vpack.c.bf16 (!%p1139_p7), %v347_v1, %v346_v0  ;;  %v349_v4 = vld [vmem:[%s314_s9 + $0x18] sm:$0xff] (!%p1139_p7) }
  0x16   : > { %s1373_s28 = scalar_lea.vmem %s1748_s5, %s1162_s20  ;;  %s1198_s29 = smul.u32 576, %s1763_s22  ;;  %v1190_v7 = vpack.c.bf16 (!%p1139_p7), %v349_v4, %v348_v2 }
  0x17   : > { %341 = sbr.rel (%p1139_p7) target bundleno = 245 (0xf5), region = 48  ;;  %1187 = vmatprep.subr.bf16.mxu0 (!%p1139_p7), %v1186_v3  ;;  %1194 = vmatprep.subr.bf16.mxu1 (!%p1139_p7), %v1186_v3 }
  0x18   : > { %s1378_s12 = scalar_lea.vmem %s1749_s6, %s1198_s29  ;;  %1189 = vmatpush3.bf16.msra.mxu0 (!%p1139_p7), %v1186_v3  ;;  %1196 = vmatpush3.bf16.msra.mxu1 (!%p1139_p7), %v1186_v3 }
  0x19   : > { %1191 = vmatprep.subr.bf16.mxu0 (!%p1139_p7), %v1190_v7  ;;  %1195 = vmatprep.subr.bf16.mxu1 (!%p1139_p7), %v1190_v7 }
  0x1c   : > { %1193 = vmatpush3.bf16.msra.mxu0 (!%p1139_p7), %v1190_v7  ;;  %1197 = vmatpush3.bf16.msra.mxu1 (!%p1139_p7), %v1190_v7 }
  0x1f   : > { %1181 = vmatmul.mubr.msk.f32.vlgmr.msra.gmra.mrb[0].mxu0 %vm350_vm0, %v343_v8  ;;  %1184 = vmatmul.mubr.msk.f32.vlgmr.msra.gmra.mrb[0].mxu1 %vm350_vm0, %v345_v9 }
  0xf2   : > { %v1182_v10 = vpop.f32.mrb[0].mxu0  ;;  %v1185_v11 = vpop.f32.mrb[0].mxu1 }
  0xf3   : > { %450 = vst.msk [vmem:[#allocation2 + $0x8] sm:$0xff] %vm448_vm1, %v1182_v10  ;;  %452 = vst.msk [vmem:[#allocation2 + $0x18] sm:$0xff] %vm448_vm1, %v1185_v11  ;;  %v429_v12 = vpop.f32.mrb[1].mxu0  ;;  %v439_v13 = vpop.f32.mrb[1].mxu1 }
  0xf4   : > { %449 = vst.msk [vmem:[#allocation2] sm:$0xff] %vm448_vm1, %v429_v12  ;;  %451 = vst.msk [vmem:[#allocation2 + $0x10] sm:$0xff] %vm448_vm1, %v439_v13 }
  0xf5 PF: > { %s1144_s18 = sshll.u32 %s1264_s21, 3  ;;  %v465_v14 = vlaneseq  ;;  %v1282_v16 = vmov 1966171168   ;;  %v459_v25 = vld [vmem:[%s1358_s13] sm:$0xff]  ;;  %s1163_s13 = sshll.u32 %s1264_s21, 8  ;;  %vm950_vm2 = vcmask 130048  }
  0xf6   : > { %v463_v17 = vunpack.c.l.s4 %v1282_v16  ;;  %s1400_s20 = scalar_lea.vmem [#allocation2], %s1144_s18  ;;  %v510_v26 = vld [vmem:[%s1363_s16] sm:$0xff]  ;;  %v461_v27 = vcombine.high %v459_v25, %v459_v25  ;;  %s1533_s16 = scalar_lea.vmem %s1378_s12, %s1163_s13 }
  0xf7   : > { %v1398_v15 = vshrl.u32 %v465_v14, 7  ;;  %v512_v30 = vcombine.high %v510_v26, %v510_v26  ;;  %p1149_p8 = scmp.ne.s32.totalorder %s1264_s21, 1 }
  0xf8   : > { %v464_v23 = vunpack.c.0.s8 %v463_v17 }
  0xf9   : > { %v1406_v19 = vsub.s32 0, %v1398_v15  ;;  %v574_v20 = vsub.s32 1, %v1398_v15  ;;  %v585_v24 = vsub.s32 2, %v1398_v15  ;;  %v596_v28 = vsub.s32 3, %v1398_v15 }
  0xfa   : > { %v607_v29 = vsub.s32 4, %v1398_v15  ;;  %v467_v31 = vsub.s32 %v464_v23, %v1398_v15  ;;  %v618_v62 = vsub.s32 5, %v1398_v15  ;;  %v629_v12 = vsub.s32 6, %v1398_v15 }
  0xfb   : > { %v1403_v18 = vld [vmem:[%s1400_s20] sm:$0xff]  ;;  %v640_v16 = vsub.s32 7, %v1398_v15 }
  0xfc   : > { %v575_v21 = vrot.slane %v1403_v18, %v574_v20  ;;  %v564_v22 = vrot.slane %v1403_v18, %v1406_v19  ;;  %v586_v32 = vrot.slane %v1403_v18, %v585_v24  ;;  %v468_v33 = vrot.slane %v459_v25, %v467_v31 }
  0xfd   : > { %v519_v34 = vrot.slane %v510_v26, %v467_v31  ;;  %v475_v35 = vrot.slane %v461_v27, %v467_v31  ;;  %v597_v36 = vrot.slane %v1403_v18, %v596_v28  ;;  %v608_v37 = vrot.slane %v1403_v18, %v607_v29 }
  0xfe   : > { %577 = vbcast.lane.b32.xlu1 %v575_v21, 256  ;;  %566 = vbcast.lane.b32.xlu0 %v564_v22, 256  ;;  %v526_v38 = vrot.slane %v512_v30, %v467_v31  ;;  %v476_v39 = vcombine.high %v468_v33, %v468_v33  ;;  %v484_v41 = vrot.slane %v468_v33, %v467_v31 }
  0xff   : > { %v527_v40 = vcombine.high %v519_v34, %v519_v34  ;;  %v535_v42 = vrot.slane %v519_v34, %v467_v31  ;;  %v491_v43 = vrot.slane %v475_v35, %v467_v31  ;;  %v477_v45 = vcombine.high %v475_v35, %v475_v35 }
 0x100   : > { %v542_v44 = vrot.slane %v526_v38, %v467_v31  ;;  %v528_v46 = vcombine.high %v526_v38, %v526_v38  ;;  %v498_v47 = vrot.slane %v476_v39, %v467_v31  ;;  %v1430_v49 = vrot.slane %v484_v41, %v1406_v19 }
 0x101   : > { %v549_v48 = vrot.slane %v527_v40, %v467_v31  ;;  %v1433_v50 = vrot.slane %v535_v42, %v1406_v19  ;;  %v506_v51 = vcombine.high %v484_v41, %v484_v41  ;;  %v557_v52 = vcombine.high %v535_v42, %v535_v42 }
 0x102   : > { %581 = vbcast.lane.b32.xlu1 %v575_v21, 264  ;;  %570 = vbcast.lane.b32.xlu0 %v564_v22, 264  ;;  %v1436_v53 = vrot.slane %v491_v43, %v1406_v19  ;;  %v1439_v54 = vrot.slane %v498_v47, %v1406_v19  ;;  %v508_v56 = vcombine.high %v498_v47, %v498_v47  ;;  %v1146_v21 = vld [vmem:[%s1400_s20 + $0x10] sm:$0xff] }
 0x103   : > { %v1442_v55 = vrot.slane %v549_v48, %v1406_v19  ;;  %v559_v57 = vcombine.high %v549_v48, %v549_v48  ;;  %v1445_v58 = vrot.slane %v506_v51, %v1406_v19  ;;  %v1448_v59 = vrot.slane %v557_v52, %v1406_v19 }
 0x104   : > { %v1451_v60 = vrot.slane %v542_v44, %v1406_v19  ;;  %v505_v61 = vrot.slane %v477_v45, %v467_v31  ;;  %v1455_v63 = vrot.slane %v508_v56, %v1406_v19  ;;  %v556_v1 = vrot.slane %v528_v46, %v467_v31 }
 0x105   : > { %v1458_v0 = vrot.slane %v559_v57, %v1406_v19  ;;  %v507_v3 = vcombine.high %v491_v43, %v491_v43  ;;  %v558_v4 = vcombine.high %v542_v44, %v542_v44  ;;  %v619_v11 = vrot.slane %v1403_v18, %v618_v62  ;;  %v1523_v57 = vld [vmem:[%s1368_s19 + $0x8] sm:$0xff] }
 0x106   : > { %592 = vbcast.lane.b32.xlu1 %v586_v32, 264  ;;  %588 = vbcast.lane.b32.xlu0 %v586_v32, 256  ;;  %v1461_v2 = vrot.slane %v505_v61, %v1406_v19  ;;  %v509_v5 = vcombine.high %v505_v61, %v505_v61  ;;  %v1464_v6 = vrot.slane %v556_v1, %v1406_v19  ;;  %v1526_v61 = vld [vmem:[%s1368_s19] sm:$0xff] }
 0x107   : > { %v560_v7 = vcombine.high %v556_v1, %v556_v1  ;;  %v1467_v8 = vrot.slane %v507_v3, %v1406_v19  ;;  %v1470_v9 = vrot.slane %v558_v4, %v1406_v19  ;;  %v630_v14 = vrot.slane %v1403_v18, %v629_v12 }
 0x108   : > { %v1473_v10 = vrot.slane %v509_v5, %v1406_v19  ;;  %v641_v17 = vrot.slane %v1403_v18, %v640_v16  ;;  %v652_v22 = vrot.slane %v1146_v21, %v1406_v19  ;;  %v663_v23 = vrot.slane %v1146_v21, %v574_v20 }
 0x109   : > { %v1478_v13 = vrot.slane %v560_v7, %v1406_v19  ;;  %v674_v25 = vrot.slane %v1146_v21, %v585_v24  ;;  %v685_v18 = vrot.slane %v1146_v21, %v596_v28  ;;  %v696_v19 = vrot.slane %v1146_v21, %v607_v29 }
 0x10a   : > { %603 = vbcast.lane.b32.xlu1 %v597_v36, 264  ;;  %599 = vbcast.lane.b32.xlu0 %v597_v36, 256  ;;  %v707_v26 = vrot.slane %v1146_v21, %v618_v62  ;;  %v718_v20 = vrot.slane %v1146_v21, %v629_v12  ;;  %v729_v27 = vrot.slane %v1146_v21, %v640_v16 }
 0x10e   : > { %614 = vbcast.lane.b32.xlu1 %v608_v37, 264  ;;  %610 = vbcast.lane.b32.xlu0 %v608_v37, 256 }
 0x112   : > { %625 = vbcast.lane.b32.xlu1 %v619_v11, 264  ;;  %621 = vbcast.lane.b32.xlu0 %v619_v11, 256 }
 0x116   : > { %636 = vbcast.lane.b32.xlu1 %v630_v14, 264  ;;  %632 = vbcast.lane.b32.xlu0 %v630_v14, 256 }
 0x11a   : > { %647 = vbcast.lane.b32.xlu1 %v641_v17, 264  ;;  %643 = vbcast.lane.b32.xlu0 %v641_v17, 256 }
 0x11e   : > { %658 = vbcast.lane.b32.xlu1 %v652_v22, 264  ;;  %654 = vbcast.lane.b32.xlu0 %v652_v22, 256 }
 0x122   : > { %669 = vbcast.lane.b32.xlu1 %v663_v23, 264  ;;  %665 = vbcast.lane.b32.xlu0 %v663_v23, 256 }
 0x126   : > { %680 = vbcast.lane.b32.xlu1 %v674_v25, 264  ;;  %676 = vbcast.lane.b32.xlu0 %v674_v25, 256 }
 0x12a   : > { %691 = vbcast.lane.b32.xlu1 %v685_v18, 264  ;;  %687 = vbcast.lane.b32.xlu0 %v685_v18, 256 }
 0x12e   : > { %702 = vbcast.lane.b32.xlu1 %v696_v19, 264  ;;  %698 = vbcast.lane.b32.xlu0 %v696_v19, 256 }
 0x132   : > { %713 = vbcast.lane.b32.xlu1 %v707_v26, 264  ;;  %709 = vbcast.lane.b32.xlu0 %v707_v26, 256 }
 0x136   : > { %724 = vbcast.lane.b32.xlu1 %v718_v20, 264  ;;  %720 = vbcast.lane.b32.xlu0 %v718_v20, 256 }
 0x13a   : > { %735 = vbcast.lane.b32.xlu1 %v729_v27, 264  ;;  %731 = vbcast.lane.b32.xlu0 %v729_v27, 256 }
 0x170   : > { %v578_v24 = vpop.permute.xlu1 %577  ;;  %v567_v30 = vpop.permute.xlu0 %566 }
 0x171   : > { %v777_v42 = vmul.f32 %v1430_v49, %v567_v30  ;;  %v865_v43 = vmul.f32 %v1433_v50, %v567_v30  ;;  %v779_v5 = vmul.f32 %v1439_v54, %v578_v24  ;;  %v867_v7 = vmul.f32 %v1442_v55, %v578_v24 }
 0x174   : > { %v582_v31 = vpop.permute.xlu1 %581  ;;  %v571_v28 = vpop.permute.xlu0 %570 }
 0x175   : > { %v778_v44 = vmul.f32 %v1430_v49, %v571_v28  ;;  %v866_v45 = vmul.f32 %v1433_v50, %v571_v28  ;;  %v780_v11 = vmul.f32 %v1439_v54, %v582_v31  ;;  %v868_v12 = vmul.f32 %v1442_v55, %v582_v31 }
 0x178   : > { %v593_v32 = vpop.permute.xlu1 %592  ;;  %v589_v33 = vpop.permute.xlu0 %588 }
 0x179   : > { %v782_v19 = vmul.f32 %v1445_v58, %v593_v32  ;;  %v870_v26 = vmul.f32 %v1448_v59, %v593_v32  ;;  %v781_v20 = vmul.f32 %v1445_v58, %v589_v33  ;;  %v869_v27 = vmul.f32 %v1448_v59, %v589_v33 }
 0x17c   : > { %v1493_v34 = vpop.permute.xlu1 %603  ;;  %v1495_v15 = vpop.permute.xlu0 %599 }
 0x180   : > { %v1497_v29 = vpop.permute.xlu1 %614  ;;  %v1499_v35 = vpop.permute.xlu0 %610 }
 0x184   : > { %v1501_v36 = vpop.permute.xlu1 %625  ;;  %v1503_v37 = vpop.permute.xlu0 %621 }
 0x188   : > { %v1505_v38 = vpop.permute.xlu1 %636  ;;  %v1507_v39 = vpop.permute.xlu0 %632 }
 0x18c   : > { %v1509_v40 = vpop.permute.xlu1 %647  ;;  %v1511_v41 = vpop.permute.xlu0 %643 }
 0x190   : > { %v659_v46 = vpop.permute.xlu1 %658  ;;  %v655_v47 = vpop.permute.xlu0 %654 }
 0x191   : > { %v834_v48 = vmul.f32 %v1433_v50, %v659_v46  ;;  %v882_v51 = vmul.f32 %v1430_v49, %v659_v46  ;;  %v833_v52 = vmul.f32 %v1433_v50, %v655_v47  ;;  %v881_v56 = vmul.f32 %v1430_v49, %v655_v47 }
 0x193   : > { %v850_v62 = vsub.f32 %v778_v44, %v834_v48  ;;  %v898_v1 = vadd.f32 %v882_v51, %v866_v45  ;;  %v849_v3 = vsub.f32 %v777_v42, %v833_v52  ;;  %v897_v4 = vadd.f32 %v881_v56, %v865_v43 }
 0x194   : > { %v670_v49 = vpop.permute.xlu1 %669  ;;  %v666_v50 = vpop.permute.xlu0 %665 }
 0x195   : > { %v916_v14 = vadd.f32 %v1523_v57, %v850_v62  ;;  %v918_v16 = vadd.f32 %v1523_v57, %v898_v1  ;;  %v915_v17 = vadd.f32 %v1526_v61, %v849_v3  ;;  %v917_v21 = vadd.f32 %v1526_v61, %v897_v4 }
 0x196   : > { %v836_v22 = vmul.f32 %v1442_v55, %v670_v49  ;;  %v884_v23 = vmul.f32 %v1439_v54, %v670_v49  ;;  %v835_v25 = vmul.f32 %v1442_v55, %v666_v50  ;;  %v883_v18 = vmul.f32 %v1439_v54, %v666_v50 }
 0x197   : > { %952 = vst.msk [vmem:[%s1533_s16 + $0x8] sm:$0xff] %vm950_vm2, %v916_v14  ;;  %954 = vst.msk [vmem:[%s1533_s16 + $0x18] sm:$0xff] %vm950_vm2, %v918_v16  ;;  %v784_v62 = vmul.f32 %v1455_v63, %v1493_v34  ;;  %v871_v1 = vmul.f32 %v1458_v0, %v1495_v15  ;;  %v786_v14 = vmul.f32 %v1436_v53, %v1497_v29 }
 0x198   : > { %951 = vst.msk [vmem:[%s1533_s16] sm:$0xff] %vm950_vm2, %v915_v17  ;;  %953 = vst.msk [vmem:[%s1533_s16 + $0x10] sm:$0xff] %vm950_vm2, %v917_v21  ;;  %v852_v24 = vsub.f32 %v780_v11, %v836_v22  ;;  %v900_v55 = vadd.f32 %v884_v23, %v868_v12  ;;  %v851_v30 = vsub.f32 %v779_v5, %v835_v25  ;;  %v681_v31 = vpop.permute.xlu1 %680  ;;  %v677_v28 = vpop.permute.xlu0 %676 }
 0x199   : > { %v899_v54 = vadd.f32 %v883_v18, %v867_v7  ;;  %v838_v32 = vmul.f32 %v1448_v59, %v681_v31  ;;  %v886_v42 = vmul.f32 %v1445_v58, %v681_v31  ;;  %v837_v33 = vmul.f32 %v1448_v59, %v677_v28 }
 0x19a   : > { %v885_v43 = vmul.f32 %v1445_v58, %v677_v28  ;;  %v920_v44 = vadd.f32 %v1523_v57, %v852_v24  ;;  %v922_v45 = vadd.f32 %v1523_v57, %v900_v55  ;;  %v919_v46 = vadd.f32 %v1526_v61, %v851_v30 }
 0x19b   : > { %v921_v47 = vadd.f32 %v1526_v61, %v899_v54  ;;  %v854_v48 = vsub.f32 %v782_v19, %v838_v32  ;;  %v902_v51 = vadd.f32 %v886_v42, %v870_v26  ;;  %v853_v52 = vsub.f32 %v781_v20, %v837_v33 }
 0x19c   : > { %v901_v56 = vadd.f32 %v885_v43, %v869_v27  ;;  %v872_v59 = vmul.f32 %v1458_v0, %v1493_v34  ;;  %v783_v58 = vmul.f32 %v1455_v63, %v1495_v15  ;;  %956 = vst.msk [vmem:[%s1533_s16 + $0x28] sm:$0xff] %vm950_vm2, %v920_v44  ;;  %958 = vst.msk [vmem:[%s1533_s16 + $0x38] sm:$0xff] %vm950_vm2, %v922_v45  ;;  %v692_v3 = vpop.permute.xlu1 %691  ;;  %v688_v4 = vpop.permute.xlu0 %687 }
 0x19d   : > { %955 = vst.msk [vmem:[%s1533_s16 + $0x20] sm:$0xff] %vm950_vm2, %v919_v46  ;;  %957 = vst.msk [vmem:[%s1533_s16 + $0x30] sm:$0xff] %vm950_vm2, %v921_v47  ;;  %v924_v34 = vadd.f32 %v1523_v57, %v854_v48  ;;  %v926_v5 = vadd.f32 %v1523_v57, %v902_v51  ;;  %v923_v15 = vadd.f32 %v1526_v61, %v853_v52 }
 0x19e   : > { %v925_v7 = vadd.f32 %v1526_v61, %v901_v56  ;;  %v840_v11 = vmul.f32 %v1458_v0, %v692_v3  ;;  %v888_v12 = vmul.f32 %v1455_v63, %v692_v3  ;;  %v839_v49 = vmul.f32 %v1458_v0, %v688_v4 }
 0x19f   : > { %v887_v50 = vmul.f32 %v1455_v63, %v688_v4  ;;  %v874_v16 = vmul.f32 %v1451_v60, %v1497_v29  ;;  %v785_v17 = vmul.f32 %v1436_v53, %v1499_v35  ;;  %v873_v21 = vmul.f32 %v1451_v60, %v1499_v35  ;;  %960 = vst.msk [vmem:[%s1533_s16 + $0x48] sm:$0xff] %vm950_vm2, %v924_v34 }
 0x1a0   : > { %962 = vst.msk [vmem:[%s1533_s16 + $0x58] sm:$0xff] %vm950_vm2, %v926_v5  ;;  %959 = vst.msk [vmem:[%s1533_s16 + $0x40] sm:$0xff] %vm950_vm2, %v923_v15  ;;  %v856_v63 = vsub.f32 %v784_v62, %v840_v11  ;;  %v904_v0 = vadd.f32 %v888_v12, %v872_v59  ;;  %v855_v22 = vsub.f32 %v783_v58, %v839_v49  ;;  %v703_v25 = vpop.permute.xlu1 %702  ;;  %v699_v29 = vpop.permute.xlu0 %698 }
 0x1a1   : > { %961 = vst.msk [vmem:[%s1533_s16 + $0x50] sm:$0xff] %vm950_vm2, %v925_v7  ;;  %v903_v23 = vadd.f32 %v887_v50, %v871_v1  ;;  %v842_v18 = vmul.f32 %v1451_v60, %v703_v25  ;;  %v890_v19 = vmul.f32 %v1436_v53, %v703_v25  ;;  %v841_v35 = vmul.f32 %v1451_v60, %v699_v29 }
 0x1a2   : > { %v889_v26 = vmul.f32 %v1436_v53, %v699_v29  ;;  %v928_v20 = vadd.f32 %v1523_v57, %v856_v63  ;;  %v930_v27 = vadd.f32 %v1523_v57, %v904_v0  ;;  %v927_v24 = vadd.f32 %v1526_v61, %v855_v22 }
 0x1a3   : > { %v929_v55 = vadd.f32 %v1526_v61, %v903_v23  ;;  %v858_v30 = vsub.f32 %v786_v14, %v842_v18  ;;  %v906_v54 = vadd.f32 %v890_v19, %v874_v16  ;;  %v857_v31 = vsub.f32 %v785_v17, %v841_v35 }
 0x1a4   : > { %v905_v28 = vadd.f32 %v889_v26, %v873_v21  ;;  %v788_v32 = vmul.f32 %v1461_v2, %v1501_v36  ;;  %v876_v60 = vmul.f32 %v1464_v6, %v1501_v36  ;;  %v787_v53 = vmul.f32 %v1461_v2, %v1503_v37  ;;  %964 = vst.msk [vmem:[%s1533_s16 + $0x68] sm:$0xff] %vm950_vm2, %v928_v20  ;;  %v714_v33 = vpop.permute.xlu1 %713  ;;  %v710_v43 = vpop.permute.xlu0 %709 }
 0x1a5   : > { %v875_v42 = vmul.f32 %v1464_v6, %v1503_v37  ;;  %966 = vst.msk [vmem:[%s1533_s16 + $0x78] sm:$0xff] %vm950_vm2, %v930_v27  ;;  %963 = vst.msk [vmem:[%s1533_s16 + $0x60] sm:$0xff] %vm950_vm2, %v927_v24  ;;  %v932_v36 = vadd.f32 %v1523_v57, %v858_v30  ;;  %v934_v44 = vadd.f32 %v1523_v57, %v906_v54  ;;  %v989_v30 = vld [vmem:[%s1373_s28 + $0x10] sm:$0xff] (!%p1149_p8)  ;;  %v990_v54 = vld [vmem:[%s1373_s28 + $0x18] sm:$0xff] (!%p1149_p8) }
 0x1a6   : > { %965 = vst.msk [vmem:[%s1533_s16 + $0x70] sm:$0xff] %vm950_vm2, %v929_v55  ;;  %v931_v37 = vadd.f32 %v1526_v61, %v857_v31  ;;  %v933_v45 = vadd.f32 %v1526_v61, %v905_v28  ;;  %v844_v46 = vmul.f32 %v1464_v6, %v714_v33  ;;  %v892_v47 = vmul.f32 %v1461_v2, %v714_v33  ;;  %v991_v31 = vld [vmem:[%s1373_s28 + $0x20] sm:$0xff] (!%p1149_p8)  ;;  %v992_v28 = vld [vmem:[%s1373_s28 + $0x28] sm:$0xff] (!%p1149_p8) }
 0x1a7   : > { %v843_v48 = vmul.f32 %v1464_v6, %v710_v43  ;;  %v891_v51 = vmul.f32 %v1461_v2, %v710_v43  ;;  %v790_v52 = vmul.f32 %v1467_v8, %v1505_v38  ;;  %v878_v56 = vmul.f32 %v1470_v9, %v1505_v38  ;;  %968 = vst.msk [vmem:[%s1533_s16 + $0x88] sm:$0xff] %vm950_vm2, %v932_v36 }
 0x1a8   : > { %v789_v62 = vmul.f32 %v1467_v8, %v1507_v39  ;;  %v877_v59 = vmul.f32 %v1470_v9, %v1507_v39  ;;  %970 = vst.msk [vmem:[%s1533_s16 + $0x98] sm:$0xff] %vm950_vm2, %v934_v44  ;;  %967 = vst.msk [vmem:[%s1533_s16 + $0x80] sm:$0xff] %vm950_vm2, %v931_v37  ;;  %v860_v2 = vsub.f32 %v788_v32, %v844_v46  ;;  %v725_v3 = vpop.permute.xlu1 %724  ;;  %v721_v38 = vpop.permute.xlu0 %720  ;;  %v993_v32 = vld [vmem:[%s1373_s28 + $0x30] sm:$0xff] (!%p1149_p8) }
 0x1a9   : > { %969 = vst.msk [vmem:[%s1533_s16 + $0x90] sm:$0xff] %vm950_vm2, %v933_v45  ;;  %v908_v6 = vadd.f32 %v892_v47, %v876_v60  ;;  %v859_v58 = vsub.f32 %v787_v53, %v843_v48  ;;  %v907_v1 = vadd.f32 %v891_v51, %v875_v42  ;;  %v846_v4 = vmul.f32 %v1470_v9, %v725_v3  ;;  %v994_v60 = vld [vmem:[%s1373_s28 + $0x38] sm:$0xff] (!%p1149_p8) }
 0x1aa   : > { %v894_v34 = vmul.f32 %v1467_v8, %v725_v3  ;;  %v845_v39 = vmul.f32 %v1470_v9, %v721_v38  ;;  %v893_v5 = vmul.f32 %v1467_v8, %v721_v38  ;;  %v936_v15 = vadd.f32 %v1523_v57, %v860_v2 }
 0x1ab   : > { %v938_v7 = vadd.f32 %v1523_v57, %v908_v6  ;;  %v935_v11 = vadd.f32 %v1526_v61, %v859_v58  ;;  %v937_v12 = vadd.f32 %v1526_v61, %v907_v1  ;;  %v862_v49 = vsub.f32 %v790_v52, %v846_v4 }
 0x1ac   : > { %v910_v50 = vadd.f32 %v894_v34, %v878_v56  ;;  %v861_v14 = vsub.f32 %v789_v62, %v845_v39  ;;  %v909_v16 = vadd.f32 %v893_v5, %v877_v59  ;;  %v792_v17 = vmul.f32 %v1473_v10, %v1509_v40  ;;  %972 = vst.msk [vmem:[%s1533_s16 + $0xa8] sm:$0xff] %vm950_vm2, %v936_v15  ;;  %v736_v63 = vpop.permute.xlu1 %735 }
 0x1ad   : > { %v880_v9 = vmul.f32 %v1478_v13, %v1509_v40  ;;  %v791_v8 = vmul.f32 %v1473_v10, %v1511_v41  ;;  %v879_v21 = vmul.f32 %v1478_v13, %v1511_v41  ;;  %974 = vst.msk [vmem:[%s1533_s16 + $0xb8] sm:$0xff] %vm950_vm2, %v938_v7  ;;  %971 = vst.msk [vmem:[%s1533_s16 + $0xa0] sm:$0xff] %vm950_vm2, %v935_v11  ;;  %v732_v40 = vpop.permute.xlu0 %731 }
 0x1ae   : > { %973 = vst.msk [vmem:[%s1533_s16 + $0xb0] sm:$0xff] %vm950_vm2, %v937_v12  ;;  %v940_v0 = vadd.f32 %v1523_v57, %v862_v49  ;;  %v942_v22 = vadd.f32 %v1523_v57, %v910_v50  ;;  %v939_v23 = vadd.f32 %v1526_v61, %v861_v14  ;;  %v941_v41 = vadd.f32 %v1526_v61, %v909_v16 }
 0x1af   : > { %v848_v25 = vmul.f32 %v1478_v13, %v736_v63  ;;  %v896_v29 = vmul.f32 %v1473_v10, %v736_v63  ;;  %v847_v18 = vmul.f32 %v1478_v13, %v732_v40  ;;  %v895_v19 = vmul.f32 %v1473_v10, %v732_v40 }
 0x1b0   : > { %976 = vst.msk [vmem:[%s1533_s16 + $0xc8] sm:$0xff] %vm950_vm2, %v940_v0  ;;  %978 = vst.msk [vmem:[%s1533_s16 + $0xd8] sm:$0xff] %vm950_vm2, %v942_v22  ;;  %986 = sbr.rel (%p1149_p8) target bundleno = 443 (0x1bb), region = 52 }
 0x1b1   : > { %975 = vst.msk [vmem:[%s1533_s16 + $0xc0] sm:$0xff] %vm950_vm2, %v939_v23  ;;  %977 = vst.msk [vmem:[%s1533_s16 + $0xd0] sm:$0xff] %vm950_vm2, %v941_v41  ;;  %v864_v35 = vsub.f32 %v792_v17, %v848_v25  ;;  %v912_v26 = vadd.f32 %v896_v29, %v880_v9  ;;  %v863_v20 = vsub.f32 %v791_v8, %v847_v18 }
 0x1b2   : > { %v911_v27 = vadd.f32 %v895_v19, %v879_v21 }
 0x1b3   : > { %v944_v24 = vadd.f32 %v1523_v57, %v864_v35  ;;  %v946_v13 = vadd.f32 %v1523_v57, %v912_v26  ;;  %v943_v55 = vadd.f32 %v1526_v61, %v863_v20  ;;  %v987_v57 = vld [vmem:[%s1373_s28] sm:$0xff] (!%p1149_p8) }
 0x1b4   : > { %v945_v10 = vadd.f32 %v1526_v61, %v911_v27  ;;  %v988_v61 = vld [vmem:[%s1373_s28 + $0x8] sm:$0xff] (!%p1149_p8) }
 0x1b5   : > { %980 = vst.msk [vmem:[%s1533_s16 + $0xe8] sm:$0xff] %vm950_vm2, %v944_v24  ;;  %982 = vst.msk [vmem:[%s1533_s16 + $0xf8] sm:$0xff] %vm950_vm2, %v946_v13 }
 0x1b6   : > { %979 = vst.msk [vmem:[%s1533_s16 + $0xe0] sm:$0xff] %vm950_vm2, %v943_v55  ;;  %981 = vst.msk [vmem:[%s1533_s16 + $0xf0] sm:$0xff] %vm950_vm2, %v945_v10 }
 0x1b7   : > { %1150 = vst.msk [vmem:[%s1378_s12 + $0x200] sm:$0xff] %vm950_vm2, %v987_v57  ;;  %1151 = vst.msk [vmem:[%s1378_s12 + $0x208] sm:$0xff] %vm950_vm2, %v988_v61 }
 0x1b8   : > { %1152 = vst.msk [vmem:[%s1378_s12 + $0x210] sm:$0xff] %vm950_vm2, %v989_v30  ;;  %1153 = vst.msk [vmem:[%s1378_s12 + $0x218] sm:$0xff] %vm950_vm2, %v990_v54 }
 0x1b9   : > { %1154 = vst.msk [vmem:[%s1378_s12 + $0x220] sm:$0xff] %vm950_vm2, %v991_v31  ;;  %1155 = vst.msk [vmem:[%s1378_s12 + $0x228] sm:$0xff] %vm950_vm2, %v992_v28 }
 0x1ba   : > { %1156 = vst.msk [vmem:[%s1378_s12 + $0x230] sm:$0xff] %vm950_vm2, %v993_v32  ;;  %1157 = vst.msk [vmem:[%s1378_s12 + $0x238] sm:$0xff] %vm950_vm2, %v994_v60 }
 0x1bb PF: > { %s16_s25 = sadd.s32 1, %s1280_s25   ;;  %s1751_s19 = sld [smem:[#allocation3_spill]] }
 0x1bc   : > { %p13_p9 = scmp.ge.s32.totalorder %s16_s25, 6   ;;  %s1752_s21 = smov %s1272_s23 }
 0x1bd   : > { %s1753_s22 = smov %s1276_s24  ;;  %s1754_s23 = smov %s1757_s26 }
 0x1be   :  { %15 = sbr.rel (!%p13_p9) target bundleno = 3 (0x3), region = 98 }
 0x1c1   : > { %s1755_s24 = smov %s1751_s19 }

</bundles_post_ra>
